<compile_context>
chip_gen: v7x
topology: tpu7x:2x2x1
jax: 0.10.0
libtpu: 0.0.40
codegen_flags: <defaults>
</compile_context>

<pallas_src>
from functools import partial

import numpy as np
import jax
import jax.numpy as jnp
from jax.experimental import pallas as pl
from jax.experimental.pallas import tpu as pltpu


def _round_up(x, m):
    return ((x + m - 1) // m) * m


def _pick_batch_block(batch, rows_per_image, row_target=512, row_cap=4096):
    """Smallest divisor of `batch` reaching ~row_target matmul rows, capped."""
    divisors = [d for d in range(1, batch + 1) if batch % d == 0]
    fitting = [d for d in divisors if d * rows_per_image <= row_cap] or [1]
    for d in fitting:
        if d * rows_per_image >= row_target:
            return d
    return fitting[-1]


# ----------------------------------------------------------------------------
# Pallas kernel: conv-as-bf16-matmul (+bias via ones column) + ReLU + VPU pool
# ----------------------------------------------------------------------------
def _make_kernel(bb, ppad, wpad, hp, wp, pool_k, pool_s):
    def kernel(patches_ref, w_ref, out_ref, rpool_ref):
        # patches_ref: (bb*Ppad, K+1)    bf16  -- pool-padded conv grid, batch-flat
        # w_ref:       (K+1, Epad)       bf16  -- flattened conv weight + bias row
        # out_ref:     (bb, hp, wp, Epad) f32
        # rpool_ref:   (hp, wpad, Epad)  f32 VMEM scratch (row-pooled map)
        #
        # Conv (+ bias) for the whole batch block as ONE MXU matmul, f32
        # accumulate; ReLU on the VPU.  Pool-pad rows stay exactly 0.
        y = jnp.dot(patches_ref[...], w_ref[...],
                    preferred_element_type=jnp.float32)
        y = jnp.maximum(y, 0.0)

        for bi in range(bb):
            boff = bi * ppad
            # Pool stage A: max over the pool_k rows of each window
            # (contiguous, sublane-aligned slices of y -> pure VPU maxes).
            for i in range(hp):
                base = boff + pool_s * i * wpad
                r = y[base:base + wpad, :]
                for pi in range(1, pool_k):
                    off = base + pi * wpad
                    r = jnp.maximum(r, y[off:off + wpad, :])
                rpool_ref[i] = r
            # Pool stage B: max over pool_k columns at stride pool_s via
            # strided sublane reads of the scratch.
            m = rpool_ref[:, pl.ds(0, wp, stride=pool_s), :]
            for pj in range(1, pool_k):
                m = jnp.maximum(m, rpool_ref[:, pl.ds(pj, wp, stride=pool_s), :])
            out_ref[bi] = m
    return kernel


# ----------------------------------------------------------------------------
# im2col (wrapper-side): (B, C, H, W) -> (B, Ho, Wo, C*k*k), minor order (c, kh, kw)
# ----------------------------------------------------------------------------
def _im2col(x, k, stride, pad):
    B, C, H, W = x.shape
    xp = jnp.pad(x, ((0, 0), (0, 0), (pad, pad), (pad, pad)))
    Ho = (H + 2 * pad - k) // stride + 1
    Wo = (W + 2 * pad - k) // stride + 1
    taps = []
    for kh in range(k):
        for kw in range(k):
            taps.append(xp[:, :, kh:kh + stride * (Ho - 1) + 1:stride,
                              kw:kw + stride * (Wo - 1) + 1:stride])
    stacked = jnp.stack(taps, axis=2)                     # (B, C, k*k, Ho, Wo)
    patches = stacked.transpose(0, 3, 4, 1, 2).reshape(B, Ho, Wo, C * k * k)
    return patches, Ho, Wo


# ----------------------------------------------------------------------------
# Wrapper: ConvTokenizer forward
# ----------------------------------------------------------------------------
@partial(jax.jit, static_argnames=("conv_kernel", "conv_stride", "conv_pad",
                                   "pool_kernel", "pool_stride", "pool_pad"))
def conv_tokenizer(x, conv_w, conv_b,
                   conv_kernel=3, conv_stride=2, conv_pad=3,
                   pool_kernel=3, pool_stride=2, pool_pad=1):
    B, C, H, W = x.shape
    E = conv_w.shape[0]
    K = C * conv_kernel * conv_kernel
    Kp = K + 1                                  # +1 ones column carrying the bias

    patches4, Hc, Wc = _im2col(x, conv_kernel, conv_stride, conv_pad)   # (B,Hc,Wc,K)

    pp = pool_pad
    Hp = (Hc + 2 * pp - pool_kernel) // pool_stride + 1
    Wp = (Wc + 2 * pp - pool_kernel) // pool_stride + 1
    Hpad = Hc + 2 * pp
    Wpad = _round_up(Wc + 2 * pp, 8)            # sublane-aligned padded width
    Epad = _round_up(E, 128)                    # lane-dense output channels
    Ppad = Hpad * Wpad                          # multiple of 8 (Wpad is)

    # Patches on the pool-padded conv grid; padding positions are all-zero
    # (including the ones column) so conv + ReLU yields exactly 0 there.
    ones = jnp.ones((B, Hc, Wc, 1), patches4.dtype)
    paug = jnp.concatenate([patches4, ones], axis=-1)                   # (B,Hc,Wc,Kp)
    paug = jnp.pad(paug, ((0, 0), (pp, Hpad - Hc - pp),
                          (pp, Wpad - Wc - pp), (0, 0)))
    patches = paug.reshape(B * Ppad, Kp).astype(jnp.bfloat16)           # batch-flat rows

    # Flattened conv weight (K, E) + bias row, channel-padded to Epad, bf16.
    wflat = conv_w.reshape(E, K).T
    wmat = jnp.concatenate([wflat, conv_b.reshape(1, E)], axis=0)       # (Kp, E)
    wmat = jnp.pad(wmat, ((0, 0), (0, Epad - E))).astype(jnp.bfloat16)

    BB = _pick_batch_block(B, Ppad)
    grid = (B // BB,)

    vmem_bytes = (2 * BB * Ppad * Kp * 2          # double-buffered bf16 patch blocks
                  + 2 * BB * Hp * Wp * Epad * 4   # double-buffered f32 output blocks
                  + Kp * Epad * 2                 # resident weights
                  + Hp * Wpad * Epad * 4          # rpool scratch
                  + BB * Ppad * Epad * 4)         # live conv activation
    vmem_limit = int(min(max(2 * vmem_bytes, 32 * 1024 * 1024), 64 * 1024 * 1024))

    kernel = _make_kernel(BB, Ppad, Wpad, Hp, Wp, pool_kernel, pool_stride)
    out = pl.pallas_call(
        kernel,
        out_shape=jax.ShapeDtypeStruct((B, Hp, Wp, Epad), jnp.float32),
        grid=grid,
        in_specs=[
            pl.BlockSpec((BB * Ppad, Kp), lambda g: (g, 0)),
            pl.BlockSpec((Kp, Epad), lambda g: (0, 0)),
        ],
        out_specs=pl.BlockSpec((BB, Hp, Wp, Epad), lambda g: (g, 0, 0, 0)),
        scratch_shapes=[pltpu.VMEM((Hp, Wpad, Epad), jnp.float32)],
        compiler_params=pltpu.CompilerParams(
            dimension_semantics=("parallel",),
            vmem_limit_bytes=vmem_limit,
        ),
    )(patches, wmat)

    # (B, Hp, Wp, Epad) -> slice real channels -> NCHW (B, E, Hp, Wp).
    return out[..., :E].transpose(0, 3, 1, 2)


# ----------------------------------------------------------------------------
# Plain-JAX reference (mirrors PyTorch Conv2d + ReLU + MaxPool2d semantics)
# ----------------------------------------------------------------------------
def conv_tokenizer_ref(x, conv_w, conv_b):
    y = jax.lax.conv_general_dilated(
        x, conv_w, window_strides=(2, 2), padding=((3, 3), (3, 3)),
        dimension_numbers=("NCHW", "OIHW", "NCHW"))
    y = y + conv_b[None, :, None, None]
    y = jnp.maximum(y, 0.0)
    y = jax.lax.reduce_window(
        y, -jnp.inf, jax.lax.max,
        window_dimensions=(1, 1, 3, 3), window_strides=(1, 1, 2, 2),
        padding=((0, 0), (0, 0), (1, 1), (1, 1)))
    return y


if __name__ == "__main__":
    # Small shapes consistent with the module: batch=2, channels=4, 16x16 image,
    # emb_dim=32.
    B, C, H, W, E = 2, 4, 16, 16, 32

    key = jax.random.PRNGKey(0)
    kx, kw, kb = jax.random.split(key, 3)
    x = jax.random.normal(kx, (B, C, H, W), dtype=jnp.float32)
    conv_w = 0.1 * jax.random.normal(kw, (E, C, 3, 3), dtype=jnp.float32)
    conv_b = 0.1 * jax.random.normal(kb, (E,), dtype=jnp.float32)

    out = jax.block_until_ready(conv_tokenizer(x, conv_w, conv_b))
    ref = jax.block_until_ready(conv_tokenizer_ref(x, conv_w, conv_b))

    assert out.shape == ref.shape, (out.shape, ref.shape)
    # bf16 MXU inputs with f32 accumulation -> tolerance relaxed vs. pure f32.
    np.testing.assert_allclose(np.asarray(out), np.asarray(ref), rtol=2e-2, atol=2e-2)
    print("KERNEL_OK")
</pallas_src>

<mosaic_0001>
module attributes {stable_mosaic.version = 11 : i64} {
  func.func @kernel(%arg0: i32, %arg1: memref<384x37xbf16, #tpu.memory_space<vmem>>, %arg2: memref<37x128xbf16, #tpu.memory_space<vmem>>, %arg3: memref<2x5x5x128xf32, #tpu.memory_space<vmem>>, %arg4: memref<5x16x128xf32, #tpu.memory_space<vmem>>) attributes {dimension_semantics = [#tpu.dimension_semantics<parallel>], iteration_bounds = array<i64: 1>, scalar_prefetch = 0 : i64, scratch_operands = 1 : i64, tpu.core_type = #tpu.core_type<tc>, window_params = [{transform_indices = @transform_0, window_bounds = array<i64: 384, 37>}, {pipeline_mode = #tpu.pipeline_mode<synchronous>, transform_indices = @transform_1, window_bounds = array<i64: 37, 128>}, {transform_indices = @transform_2, window_bounds = array<i64: 2, 5, 5, 128>}]} {
    %c0 = arith.constant 0 : index
    %c0_0 = arith.constant 0 : index
    %0 = vector.load %arg1[%c0, %c0_0] : memref<384x37xbf16, #tpu.memory_space<vmem>>, vector<384x37xbf16>
    %c0_1 = arith.constant 0 : index
    %c0_2 = arith.constant 0 : index
    %1 = vector.load %arg2[%c0_1, %c0_2] : memref<37x128xbf16, #tpu.memory_space<vmem>>, vector<37x128xbf16>
    %cst = arith.constant dense<0.000000e+00> : vector<384x128xf32>
    %2 = tpu.matmul %0, %1, %cst {dimension_numbers = #tpu.dot_dimension_numbers<[1], [0], [0], [1], [0, 0, 1, 1], [], []>} : vector<384x37xbf16>, vector<37x128xbf16>, vector<384x128xf32> -> vector<384x128xf32>
    %cst_3 = arith.constant 0.000000e+00 : f32
    %3 = vector.broadcast %cst_3 : f32 to vector<384x128xf32>
    %4 = arith.maximumf %2, %3 : vector<384x128xf32>
    %5 = vector.extract_strided_slice %4 {offsets = [0, 0], sizes = [16, 128], strides = [1, 1]} : vector<384x128xf32> to vector<16x128xf32>
    %6 = vector.extract_strided_slice %4 {offsets = [16, 0], sizes = [16, 128], strides = [1, 1]} : vector<384x128xf32> to vector<16x128xf32>
    %7 = arith.maximumf %5, %6 : vector<16x128xf32>
    %8 = vector.extract_strided_slice %4 {offsets = [32, 0], sizes = [16, 128], strides = [1, 1]} : vector<384x128xf32> to vector<16x128xf32>
    %9 = arith.maximumf %7, %8 : vector<16x128xf32>
    %c0_4 = arith.constant 0 : index
    %c0_5 = arith.constant 0 : index
    %c0_6 = arith.constant 0 : index
    %10 = vector.load %arg4[%c0_4, %c0_5, %c0_6] : memref<5x16x128xf32, #tpu.memory_space<vmem>>, vector<1x16x128xf32>
    %11 = vector.shape_cast %10 : vector<1x16x128xf32> to vector<16x128xf32>
    %12 = vector.shape_cast %9 : vector<16x128xf32> to vector<1x16x128xf32>
    tpu.vector_store %arg4[%c0_4, %c0_5, %c0_6], %12 {strides = array<i32>} : memref<5x16x128xf32, #tpu.memory_space<vmem>>, vector<1x16x128xf32>,
    %13 = vector.extract_strided_slice %4 {offsets = [32, 0], sizes = [16, 128], strides = [1, 1]} : vector<384x128xf32> to vector<16x128xf32>
    %14 = vector.extract_strided_slice %4 {offsets = [48, 0], sizes = [16, 128], strides = [1, 1]} : vector<384x128xf32> to vector<16x128xf32>
    %15 = arith.maximumf %13, %14 : vector<16x128xf32>
    %16 = vector.extract_strided_slice %4 {offsets = [64, 0], sizes = [16, 128], strides = [1, 1]} : vector<384x128xf32> to vector<16x128xf32>
    %17 = arith.maximumf %15, %16 : vector<16x128xf32>
    %c1 = arith.constant 1 : index
    %c0_7 = arith.constant 0 : index
    %c0_8 = arith.constant 0 : index
    %18 = vector.load %arg4[%c1, %c0_7, %c0_8] : memref<5x16x128xf32, #tpu.memory_space<vmem>>, vector<1x16x128xf32>
    %19 = vector.shape_cast %18 : vector<1x16x128xf32> to vector<16x128xf32>
    %20 = vector.shape_cast %17 : vector<16x128xf32> to vector<1x16x128xf32>
    tpu.vector_store %arg4[%c1, %c0_7, %c0_8], %20 {strides = array<i32>} : memref<5x16x128xf32, #tpu.memory_space<vmem>>, vector<1x16x128xf32>,
    %21 = vector.extract_strided_slice %4 {offsets = [64, 0], sizes = [16, 128], strides = [1, 1]} : vector<384x128xf32> to vector<16x128xf32>
    %22 = vector.extract_strided_slice %4 {offsets = [80, 0], sizes = [16, 128], strides = [1, 1]} : vector<384x128xf32> to vector<16x128xf32>
    %23 = arith.maximumf %21, %22 : vector<16x128xf32>
    %24 = vector.extract_strided_slice %4 {offsets = [96, 0], sizes = [16, 128], strides = [1, 1]} : vector<384x128xf32> to vector<16x128xf32>
    %25 = arith.maximumf %23, %24 : vector<16x128xf32>
    %c2 = arith.constant 2 : index
    %c0_9 = arith.constant 0 : index
    %c0_10 = arith.constant 0 : index
    %26 = vector.load %arg4[%c2, %c0_9, %c0_10] : memref<5x16x128xf32, #tpu.memory_space<vmem>>, vector<1x16x128xf32>
    %27 = vector.shape_cast %26 : vector<1x16x128xf32> to vector<16x128xf32>
    %28 = vector.shape_cast %25 : vector<16x128xf32> to vector<1x16x128xf32>
    tpu.vector_store %arg4[%c2, %c0_9, %c0_10], %28 {strides = array<i32>} : memref<5x16x128xf32, #tpu.memory_space<vmem>>, vector<1x16x128xf32>,
    %29 = vector.extract_strided_slice %4 {offsets = [96, 0], sizes = [16, 128], strides = [1, 1]} : vector<384x128xf32> to vector<16x128xf32>
    %30 = vector.extract_strided_slice %4 {offsets = [112, 0], sizes = [16, 128], strides = [1, 1]} : vector<384x128xf32> to vector<16x128xf32>
    %31 = arith.maximumf %29, %30 : vector<16x128xf32>
    %32 = vector.extract_strided_slice %4 {offsets = [128, 0], sizes = [16, 128], strides = [1, 1]} : vector<384x128xf32> to vector<16x128xf32>
    %33 = arith.maximumf %31, %32 : vector<16x128xf32>
    %c3 = arith.constant 3 : index
    %c0_11 = arith.constant 0 : index
    %c0_12 = arith.constant 0 : index
    %34 = vector.load %arg4[%c3, %c0_11, %c0_12] : memref<5x16x128xf32, #tpu.memory_space<vmem>>, vector<1x16x128xf32>
    %35 = vector.shape_cast %34 : vector<1x16x128xf32> to vector<16x128xf32>
    %36 = vector.shape_cast %33 : vector<16x128xf32> to vector<1x16x128xf32>
    tpu.vector_store %arg4[%c3, %c0_11, %c0_12], %36 {strides = array<i32>} : memref<5x16x128xf32, #tpu.memory_space<vmem>>, vector<1x16x128xf32>,
    %37 = vector.extract_strided_slice %4 {offsets = [128, 0], sizes = [16, 128], strides = [1, 1]} : vector<384x128xf32> to vector<16x128xf32>
    %38 = vector.extract_strided_slice %4 {offsets = [144, 0], sizes = [16, 128], strides = [1, 1]} : vector<384x128xf32> to vector<16x128xf32>
    %39 = arith.maximumf %37, %38 : vector<16x128xf32>
    %40 = vector.extract_strided_slice %4 {offsets = [160, 0], sizes = [16, 128], strides = [1, 1]} : vector<384x128xf32> to vector<16x128xf32>
    %41 = arith.maximumf %39, %40 : vector<16x128xf32>
    %c4 = arith.constant 4 : index
    %c0_13 = arith.constant 0 : index
    %c0_14 = arith.constant 0 : index
    %42 = vector.load %arg4[%c4, %c0_13, %c0_14] : memref<5x16x128xf32, #tpu.memory_space<vmem>>, vector<1x16x128xf32>
    %43 = vector.shape_cast %42 : vector<1x16x128xf32> to vector<16x128xf32>
    %44 = vector.shape_cast %41 : vector<16x128xf32> to vector<1x16x128xf32>
    tpu.vector_store %arg4[%c4, %c0_13, %c0_14], %44 {strides = array<i32>} : memref<5x16x128xf32, #tpu.memory_space<vmem>>, vector<1x16x128xf32>,
    %c0_15 = arith.constant 0 : index
    %c0_16 = arith.constant 0 : index
    %c0_17 = arith.constant 0 : index
    %45 = tpu.strided_load %arg4[%c0_15, %c0_16, %c0_17] {strides = array<i32: 1, 2, 1>} : memref<5x16x128xf32, #tpu.memory_space<vmem>>, vector<5x5x128xf32>
    %c0_18 = arith.constant 0 : index
    %c1_19 = arith.constant 1 : index
    %c0_20 = arith.constant 0 : index
    %46 = tpu.strided_load %arg4[%c0_18, %c1_19, %c0_20] {strides = array<i32: 1, 2, 1>} : memref<5x16x128xf32, #tpu.memory_space<vmem>>, vector<5x5x128xf32>
    %47 = arith.maximumf %45, %46 : vector<5x5x128xf32>
    %c0_21 = arith.constant 0 : index
    %c2_22 = arith.constant 2 : index
    %c0_23 = arith.constant 0 : index
    %48 = tpu.strided_load %arg4[%c0_21, %c2_22, %c0_23] {strides = array<i32: 1, 2, 1>} : memref<5x16x128xf32, #tpu.memory_space<vmem>>, vector<5x5x128xf32>
    %49 = arith.maximumf %47, %48 : vector<5x5x128xf32>
    %c0_24 = arith.constant 0 : index
    %c0_25 = arith.constant 0 : index
    %c0_26 = arith.constant 0 : index
    %c0_27 = arith.constant 0 : index
    %50 = vector.load %arg3[%c0_24, %c0_25, %c0_26, %c0_27] : memref<2x5x5x128xf32, #tpu.memory_space<vmem>>, vector<1x5x5x128xf32>
    %51 = vector.shape_cast %50 : vector<1x5x5x128xf32> to vector<5x5x128xf32>
    %52 = vector.shape_cast %49 : vector<5x5x128xf32> to vector<1x5x5x128xf32>
    tpu.vector_store %arg3[%c0_24, %c0_25, %c0_26, %c0_27], %52 {strides = array<i32>} : memref<2x5x5x128xf32, #tpu.memory_space<vmem>>, vector<1x5x5x128xf32>,
    %53 = vector.extract_strided_slice %4 {offsets = [192, 0], sizes = [16, 128], strides = [1, 1]} : vector<384x128xf32> to vector<16x128xf32>
    %54 = vector.extract_strided_slice %4 {offsets = [208, 0], sizes = [16, 128], strides = [1, 1]} : vector<384x128xf32> to vector<16x128xf32>
    %55 = arith.maximumf %53, %54 : vector<16x128xf32>
    %56 = vector.extract_strided_slice %4 {offsets = [224, 0], sizes = [16, 128], strides = [1, 1]} : vector<384x128xf32> to vector<16x128xf32>
    %57 = arith.maximumf %55, %56 : vector<16x128xf32>
    %c0_28 = arith.constant 0 : index
    %c0_29 = arith.constant 0 : index
    %c0_30 = arith.constant 0 : index
    %58 = vector.load %arg4[%c0_28, %c0_29, %c0_30] : memref<5x16x128xf32, #tpu.memory_space<vmem>>, vector<1x16x128xf32>
    %59 = vector.shape_cast %58 : vector<1x16x128xf32> to vector<16x128xf32>
    %60 = vector.shape_cast %57 : vector<16x128xf32> to vector<1x16x128xf32>
    tpu.vector_store %arg4[%c0_28, %c0_29, %c0_30], %60 {strides = array<i32>} : memref<5x16x128xf32, #tpu.memory_space<vmem>>, vector<1x16x128xf32>,
    %61 = vector.extract_strided_slice %4 {offsets = [224, 0], sizes = [16, 128], strides = [1, 1]} : vector<384x128xf32> to vector<16x128xf32>
    %62 = vector.extract_strided_slice %4 {offsets = [240, 0], sizes = [16, 128], strides = [1, 1]} : vector<384x128xf32> to vector<16x128xf32>
    %63 = arith.maximumf %61, %62 : vector<16x128xf32>
    %64 = vector.extract_strided_slice %4 {offsets = [256, 0], sizes = [16, 128], strides = [1, 1]} : vector<384x128xf32> to vector<16x128xf32>
    %65 = arith.maximumf %63, %64 : vector<16x128xf32>
    %c1_31 = arith.constant 1 : index
    %c0_32 = arith.constant 0 : index
    %c0_33 = arith.constant 0 : index
    %66 = vector.load %arg4[%c1_31, %c0_32, %c0_33] : memref<5x16x128xf32, #tpu.memory_space<vmem>>, vector<1x16x128xf32>
    %67 = vector.shape_cast %66 : vector<1x16x128xf32> to vector<16x128xf32>
    %68 = vector.shape_cast %65 : vector<16x128xf32> to vector<1x16x128xf32>
    tpu.vector_store %arg4[%c1_31, %c0_32, %c0_33], %68 {strides = array<i32>} : memref<5x16x128xf32, #tpu.memory_space<vmem>>, vector<1x16x128xf32>,
    %69 = vector.extract_strided_slice %4 {offsets = [256, 0], sizes = [16, 128], strides = [1, 1]} : vector<384x128xf32> to vector<16x128xf32>
    %70 = vector.extract_strided_slice %4 {offsets = [272, 0], sizes = [16, 128], strides = [1, 1]} : vector<384x128xf32> to vector<16x128xf32>
    %71 = arith.maximumf %69, %70 : vector<16x128xf32>
    %72 = vector.extract_strided_slice %4 {offsets = [288, 0], sizes = [16, 128], strides = [1, 1]} : vector<384x128xf32> to vector<16x128xf32>
    %73 = arith.maximumf %71, %72 : vector<16x128xf32>
    %c2_34 = arith.constant 2 : index
    %c0_35 = arith.constant 0 : index
    %c0_36 = arith.constant 0 : index
    %74 = vector.load %arg4[%c2_34, %c0_35, %c0_36] : memref<5x16x128xf32, #tpu.memory_space<vmem>>, vector<1x16x128xf32>
    %75 = vector.shape_cast %74 : vector<1x16x128xf32> to vector<16x128xf32>
    %76 = vector.shape_cast %73 : vector<16x128xf32> to vector<1x16x128xf32>
    tpu.vector_store %arg4[%c2_34, %c0_35, %c0_36], %76 {strides = array<i32>} : memref<5x16x128xf32, #tpu.memory_space<vmem>>, vector<1x16x128xf32>,
    %77 = vector.extract_strided_slice %4 {offsets = [288, 0], sizes = [16, 128], strides = [1, 1]} : vector<384x128xf32> to vector<16x128xf32>
    %78 = vector.extract_strided_slice %4 {offsets = [304, 0], sizes = [16, 128], strides = [1, 1]} : vector<384x128xf32> to vector<16x128xf32>
    %79 = arith.maximumf %77, %78 : vector<16x128xf32>
    %80 = vector.extract_strided_slice %4 {offsets = [320, 0], sizes = [16, 128], strides = [1, 1]} : vector<384x128xf32> to vector<16x128xf32>
    %81 = arith.maximumf %79, %80 : vector<16x128xf32>
    %c3_37 = arith.constant 3 : index
    %c0_38 = arith.constant 0 : index
    %c0_39 = arith.constant 0 : index
    %82 = vector.load %arg4[%c3_37, %c0_38, %c0_39] : memref<5x16x128xf32, #tpu.memory_space<vmem>>, vector<1x16x128xf32>
    %83 = vector.shape_cast %82 : vector<1x16x128xf32> to vector<16x128xf32>
    %84 = vector.shape_cast %81 : vector<16x128xf32> to vector<1x16x128xf32>
    tpu.vector_store %arg4[%c3_37, %c0_38, %c0_39], %84 {strides = array<i32>} : memref<5x16x128xf32, #tpu.memory_space<vmem>>, vector<1x16x128xf32>,
    %85 = vector.extract_strided_slice %4 {offsets = [320, 0], sizes = [16, 128], strides = [1, 1]} : vector<384x128xf32> to vector<16x128xf32>
    %86 = vector.extract_strided_slice %4 {offsets = [336, 0], sizes = [16, 128], strides = [1, 1]} : vector<384x128xf32> to vector<16x128xf32>
    %87 = arith.maximumf %85, %86 : vector<16x128xf32>
    %88 = vector.extract_strided_slice %4 {offsets = [352, 0], sizes = [16, 128], strides = [1, 1]} : vector<384x128xf32> to vector<16x128xf32>
    %89 = arith.maximumf %87, %88 : vector<16x128xf32>
    %c4_40 = arith.constant 4 : index
    %c0_41 = arith.constant 0 : index
    %c0_42 = arith.constant 0 : index
    %90 = vector.load %arg4[%c4_40, %c0_41, %c0_42] : memref<5x16x128xf32, #tpu.memory_space<vmem>>, vector<1x16x128xf32>
    %91 = vector.shape_cast %90 : vector<1x16x128xf32> to vector<16x128xf32>
    %92 = vector.shape_cast %89 : vector<16x128xf32> to vector<1x16x128xf32>
    tpu.vector_store %arg4[%c4_40, %c0_41, %c0_42], %92 {strides = array<i32>} : memref<5x16x128xf32, #tpu.memory_space<vmem>>, vector<1x16x128xf32>,
    %c0_43 = arith.constant 0 : index
    %c0_44 = arith.constant 0 : index
    %c0_45 = arith.constant 0 : index
    %93 = tpu.strided_load %arg4[%c0_43, %c0_44, %c0_45] {strides = array<i32: 1, 2, 1>} : memref<5x16x128xf32, #tpu.memory_space<vmem>>, vector<5x5x128xf32>
    %c0_46 = arith.constant 0 : index
    %c1_47 = arith.constant 1 : index
    %c0_48 = arith.constant 0 : index
    %94 = tpu.strided_load %arg4[%c0_46, %c1_47, %c0_48] {strides = array<i32: 1, 2, 1>} : memref<5x16x128xf32, #tpu.memory_space<vmem>>, vector<5x5x128xf32>
    %95 = arith.maximumf %93, %94 : vector<5x5x128xf32>
    %c0_49 = arith.constant 0 : index
    %c2_50 = arith.constant 2 : index
    %c0_51 = arith.constant 0 : index
    %96 = tpu.strided_load %arg4[%c0_49, %c2_50, %c0_51] {strides = array<i32: 1, 2, 1>} : memref<5x16x128xf32, #tpu.memory_space<vmem>>, vector<5x5x128xf32>
    %97 = arith.maximumf %95, %96 : vector<5x5x128xf32>
    %c1_52 = arith.constant 1 : index
    %c0_53 = arith.constant 0 : index
    %c0_54 = arith.constant 0 : index
    %c0_55 = arith.constant 0 : index
    %98 = vector.load %arg3[%c1_52, %c0_53, %c0_54, %c0_55] : memref<2x5x5x128xf32, #tpu.memory_space<vmem>>, vector<1x5x5x128xf32>
    %99 = vector.shape_cast %98 : vector<1x5x5x128xf32> to vector<5x5x128xf32>
    %100 = vector.shape_cast %97 : vector<5x5x128xf32> to vector<1x5x5x128xf32>
    tpu.vector_store %arg3[%c1_52, %c0_53, %c0_54, %c0_55], %100 {strides = array<i32>} : memref<2x5x5x128xf32, #tpu.memory_space<vmem>>, vector<1x5x5x128xf32>,
    return
  }
  func.func @transform_0(%arg0: i32) -> (i32, i32) {
    %c0_i32 = arith.constant 0 : i32
    %c0_i32_0 = arith.constant 0 : i32
    return %arg0, %c0_i32 : i32, i32
  }
  func.func @transform_1(%arg0: i32) -> (i32, i32) {
    %c0_i32 = arith.constant 0 : i32
    %c0_i32_0 = arith.constant 0 : i32
    %c0_i32_1 = arith.constant 0 : i32
    return %c0_i32, %c0_i32_0 : i32, i32
  }
  func.func @transform_2(%arg0: i32) -> (i32, i32, i32, i32) {
    %c0_i32 = arith.constant 0 : i32
    %c0_i32_0 = arith.constant 0 : i32
    %c0_i32_1 = arith.constant 0 : i32
    %c0_i32_2 = arith.constant 0 : i32
    return %arg0, %c0_i32, %c0_i32_0, %c0_i32_1 : i32, i32, i32, i32
  }
}

</mosaic_0001>

<bundles_post_ra>
// kernel: conv_tokenizer.1
= control target key start
LH: loop header
LB: loop body
LE: loop exit
PB: predicated region body
PF: predicated region fallthrough
CT: control target
= control target key end

     0   :  { %vm273_vm0 = vcmask 1041408   ;;  %vm274_vm1 = vcmask 1042432   ;;  %vm200_vm2 = vcmask 302080   ;;  %v859_v1 = vmov 65535   ;;  %s1010_s1 = inlined_call_operand.vmem [shape: bf16[37,128], index: 1, kind: input, shape index: {}]   ;;  %s1011_s0 = inlined_call_operand.vmem [shape: bf16[384,37], index: 0, kind: input, shape index: {}]   ;;  %s1012_s2 = inlined_call_operand.vmem [shape: f32[2,5,5,128], index: 2, kind: output, shape index: {}]  }
   0x1   :  { %v832_v0 = vld [vmem:[%s1010_s1] sm:$0xff]   ;;  %v275_v2 = vsel %vm273_vm0, 4294967295, %v859_v1  ;;  %v833_v3 = vld [vmem:[%s1010_s1 + $0x8] sm:$0xff]   ;;  %v834_v5 = vld [vmem:[%s1010_s1 + $0x10] ss:$0 sps:$4 sm:$0x77]  }
   0x2   :  { %v276_v4 = vsel %vm274_vm1, %v275_v2, 0  ;;  %771 = vmatprep.subr.bf16.mxu0 %v832_v0  ;;  %825 = vmatprep.subr.bf16.mxu1 %v832_v0  ;;  %v835_v6 = vld [vmem:[%s1011_s0] sm:$0xff]   ;;  %v837_v9 = vld [vmem:[%s1011_s0 + $0x8] sm:$0xff]   ;;  %v839_v11 = vld [vmem:[%s1011_s0 + $0x10] sm:$0xff]  }
   0x3   :  { %772 = vmatpush3.bf16.msra.mxu0 %v832_v0  ;;  %828 = vmatpush3.bf16.msra.mxu1 %v832_v0  ;;  %v278_v7 = vand.u32 %v834_v5, %v276_v4  ;;  %v836_v8 = vld [vmem:[%s1011_s0 + $0x60] sm:$0xff]   ;;  %v838_v10 = vld [vmem:[%s1011_s0 + $0x68] sm:$0xff]   ;;  %v840_v12 = vld [vmem:[%s1011_s0 + $0x70] sm:$0xff]  }
   0x4   :  { %773 = vmatprep.subr.bf16.mxu0 %v833_v3  ;;  %826 = vmatprep.subr.bf16.mxu1 %v833_v3  ;;  %v841_v13 = vld [vmem:[%s1011_s0 + $0x18] sm:$0xff]   ;;  %v843_v15 = vld [vmem:[%s1011_s0 + $0x20] sm:$0xff]   ;;  %v845_v17 = vld [vmem:[%s1011_s0 + $0x28] sm:$0xff]  }
   0x5   :  { %777 = vmatprep.mubr.msk.bf16.mxu0 %vm200_vm2, %v835_v6  ;;  %801 = vmatprep.mubr.msk.bf16.mxu1 %vm200_vm2, %v836_v8  ;;  %v842_v14 = vld [vmem:[%s1011_s0 + $0x78] sm:$0xff]   ;;  %v844_v16 = vld [vmem:[%s1011_s0 + $0x80] sm:$0xff]   ;;  %v846_v18 = vld [vmem:[%s1011_s0 + $0x88] sm:$0xff]  }
   0x6   :  { %v847_v19 = vld [vmem:[%s1011_s0 + $0x30] sm:$0xff]   ;;  %v849_v21 = vld [vmem:[%s1011_s0 + $0x38] sm:$0xff]   ;;  %v851_v23 = vld [vmem:[%s1011_s0 + $0x40] sm:$0xff]  }
   0x7   :  { %774 = vmatpush3.bf16.msra.mxu0 %v833_v3  ;;  %829 = vmatpush3.bf16.msra.mxu1 %v833_v3  ;;  %v848_v20 = vld [vmem:[%s1011_s0 + $0x90] sm:$0xff]   ;;  %v850_v22 = vld [vmem:[%s1011_s0 + $0x98] sm:$0xff]   ;;  %v852_v24 = vld [vmem:[%s1011_s0 + $0xa0] sm:$0xff]  }
   0x8   :  { %775 = vmatprep.subr.bf16.mxu0 %v278_v7  ;;  %827 = vmatprep.subr.bf16.mxu1 %v278_v7  ;;  %v853_v25 = vld [vmem:[%s1011_s0 + $0x48] sm:$0xff]   ;;  %v855_v27 = vld [vmem:[%s1011_s0 + $0x50] sm:$0xff]   ;;  %v857_v29 = vld [vmem:[%s1011_s0 + $0x58] sm:$0xff]  }
   0x9   :  { %v854_v26 = vld [vmem:[%s1011_s0 + $0xa8] sm:$0xff]   ;;  %v856_v28 = vld [vmem:[%s1011_s0 + $0xb0] sm:$0xff]   ;;  %v858_v30 = vld [vmem:[%s1011_s0 + $0xb8] sm:$0xff]  }
   0xb   :  { %776 = vmatpush3.bf16.msra.mxu0 %v278_v7  ;;  %830 = vmatpush3.bf16.msra.mxu1 %v278_v7 }
   0xe   :  { %778 = vmatmul.mubr.msk.bf16.vlgmr.msra.gmra.mrb[0].mxu0 %vm200_vm2, %v837_v9  ;;  %802 = vmatmul.mubr.msk.bf16.vlgmr.msra.gmra.mrb[0].mxu1 %vm200_vm2, %v838_v10 }
   0xf   :  { %781 = vmatprep.mubr.msk.bf16.mxu0 %vm200_vm2, %v839_v11  ;;  %805 = vmatprep.mubr.msk.bf16.mxu1 %vm200_vm2, %v840_v12 }
  0x16   :  { %782 = vmatmul.mubr.msk.bf16.gmra.mrb[4].mxu0 %vm200_vm2, %v841_v13  ;;  %806 = vmatmul.mubr.msk.bf16.gmra.mrb[4].mxu1 %vm200_vm2, %v842_v14 }
  0x17   :  { %785 = vmatprep.mubr.msk.bf16.mxu0 %vm200_vm2, %v843_v15  ;;  %809 = vmatprep.mubr.msk.bf16.mxu1 %vm200_vm2, %v844_v16 }
  0x1e   :  { %786 = vmatmul.mubr.msk.bf16.gmra.mrb[8].mxu0 %vm200_vm2, %v845_v17  ;;  %810 = vmatmul.mubr.msk.bf16.gmra.mrb[8].mxu1 %vm200_vm2, %v846_v18 }
  0x1f   :  { %789 = vmatprep.mubr.msk.bf16.mxu0 %vm200_vm2, %v847_v19  ;;  %813 = vmatprep.mubr.msk.bf16.mxu1 %vm200_vm2, %v848_v20 }
  0x26   :  { %790 = vmatmul.mubr.msk.bf16.gmra.mrb[12].mxu0 %vm200_vm2, %v849_v21  ;;  %814 = vmatmul.mubr.msk.bf16.gmra.mrb[12].mxu1 %vm200_vm2, %v850_v22 }
  0x27   :  { %793 = vmatprep.mubr.msk.bf16.mxu0 %vm200_vm2, %v851_v23  ;;  %817 = vmatprep.mubr.msk.bf16.mxu1 %vm200_vm2, %v852_v24 }
  0x2e   :  { %794 = vmatmul.mubr.msk.bf16.gmra.mrb[16].mxu0 %vm200_vm2, %v853_v25  ;;  %818 = vmatmul.mubr.msk.bf16.gmra.mrb[16].mxu1 %vm200_vm2, %v854_v26 }
  0x2f   :  { %797 = vmatprep.mubr.msk.bf16.mxu0 %vm200_vm2, %v855_v27  ;;  %821 = vmatprep.mubr.msk.bf16.mxu1 %vm200_vm2, %v856_v28 }
  0x36   :  { %798 = vmatmul.mubr.msk.bf16.gmra.mrb[20].mxu0 %vm200_vm2, %v857_v29  ;;  %822 = vmatmul.mubr.msk.bf16.gmra.mrb[20].mxu1 %vm200_vm2, %v858_v30 }
  0xe1   :  { %v779_v31 = vpop.f32.mrb[0].mxu0  ;;  %v803_v32 = vpop.f32.mrb[0].mxu1 }
  0xe2   :  { %v503_v33 = vmax.f32 %v779_v31, 0.0  ;;  %v314_v34 = vpop.f32.mrb[1].mxu0  ;;  %v525_v35 = vmax.f32 %v803_v32, 0.0  ;;  %v408_v36 = vpop.f32.mrb[1].mxu1 }
  0xe3   :  { %v501_v37 = vmax.f32 %v314_v34, 0.0  ;;  %v780_v38 = vpop.f32.mrb[2].mxu0  ;;  %v523_v39 = vmax.f32 %v408_v36, 0.0  ;;  %v804_v40 = vpop.f32.mrb[2].mxu1 }
  0xe4   :  { %v504_v41 = vmax.f32 %v780_v38, 0.0  ;;  %v317_v42 = vpop.f32.mrb[3].mxu0  ;;  %v526_v43 = vmax.f32 %v804_v40, 0.0  ;;  %v411_v44 = vpop.f32.mrb[3].mxu1 }
  0xe5   :  { %v545_v45 = vmax.f32 %v501_v37, %v503_v33  ;;  %v502_v46 = vmax.f32 %v317_v42, 0.0  ;;  %v623_v47 = vmax.f32 %v523_v39, %v525_v35  ;;  %v524_v48 = vmax.f32 %v411_v44, 0.0 }
  0xe7   :  { %v546_v49 = vmax.f32 %v502_v46, %v504_v41  ;;  %v624_v50 = vmax.f32 %v524_v48, %v526_v43 }
  0xe9   :  { %v783_v51 = vpop.f32.mrb[4].mxu0  ;;  %v807_v52 = vpop.f32.mrb[4].mxu1 }
  0xea   :  { %v507_v53 = vmax.f32 %v783_v51, 0.0  ;;  %v529_v54 = vmax.f32 %v807_v52, 0.0  ;;  %v330_v55 = vpop.f32.mrb[5].mxu0  ;;  %v424_v56 = vpop.f32.mrb[5].mxu1 }
  0xeb   :  { %v505_v57 = vmax.f32 %v330_v55, 0.0  ;;  %v527_v58 = vmax.f32 %v424_v56, 0.0  ;;  %v784_v59 = vpop.f32.mrb[6].mxu0  ;;  %v808_v60 = vpop.f32.mrb[6].mxu1 }
  0xec   :  { %v508_v61 = vmax.f32 %v784_v59, 0.0  ;;  %v530_v62 = vmax.f32 %v808_v60, 0.0  ;;  %v333_v63 = vpop.f32.mrb[7].mxu0  ;;  %v427_v0 = vpop.f32.mrb[7].mxu1 }
  0xed   :  { %v547_v1 = vmax.f32 %v545_v45, %v505_v57  ;;  %v551_v2 = vmax.f32 %v505_v57, %v507_v53  ;;  %v625_v3 = vmax.f32 %v623_v47, %v527_v58  ;;  %v629_v4 = vmax.f32 %v527_v58, %v529_v54 }
  0xee   :  { %v506_v5 = vmax.f32 %v333_v63, 0.0  ;;  %v528_v6 = vmax.f32 %v427_v0, 0.0 }
  0xef   :  { %549 = vst [vmem:[#allocation2] sm:$0xff] %v547_v1 }
  0xf0   :  { %v548_v7 = vmax.f32 %v546_v49, %v506_v5  ;;  %v552_v8 = vmax.f32 %v506_v5, %v508_v61  ;;  %v626_v9 = vmax.f32 %v624_v50, %v528_v6  ;;  %v630_v10 = vmax.f32 %v528_v6, %v530_v62 }
  0xf1   :  { %v787_v11 = vpop.f32.mrb[8].mxu0  ;;  %v811_v12 = vpop.f32.mrb[8].mxu1 }
  0xf2   :  { %550 = vst [vmem:[#allocation2 + $0x8] sm:$0xff] %v548_v7  ;;  %v511_v13 = vmax.f32 %v787_v11, 0.0  ;;  %v533_v14 = vmax.f32 %v811_v12, 0.0  ;;  %v346_v15 = vpop.f32.mrb[9].mxu0  ;;  %v440_v16 = vpop.f32.mrb[9].mxu1 }
  0xf3   :  { %v509_v17 = vmax.f32 %v346_v15, 0.0  ;;  %v531_v18 = vmax.f32 %v440_v16, 0.0  ;;  %v788_v19 = vpop.f32.mrb[10].mxu0  ;;  %v812_v20 = vpop.f32.mrb[10].mxu1 }
  0xf4   :  { %v512_v21 = vmax.f32 %v788_v19, 0.0  ;;  %v534_v22 = vmax.f32 %v812_v20, 0.0  ;;  %v349_v23 = vpop.f32.mrb[11].mxu0  ;;  %v443_v24 = vpop.f32.mrb[11].mxu1 }
  0xf5   :  { %v553_v25 = vmax.f32 %v551_v2, %v509_v17  ;;  %v558_v26 = vmax.f32 %v509_v17, %v511_v13  ;;  %v631_v27 = vmax.f32 %v629_v4, %v531_v18  ;;  %v635_v28 = vmax.f32 %v531_v18, %v533_v14 }
  0xf6   :  { %v510_v29 = vmax.f32 %v349_v23, 0.0  ;;  %v532_v30 = vmax.f32 %v443_v24, 0.0 }
  0xf7   :  { %556 = vst [vmem:[#allocation2 + $0x10] sm:$0xff] %v553_v25 }
  0xf8   :  { %v554_v31 = vmax.f32 %v552_v8, %v510_v29  ;;  %v559_v32 = vmax.f32 %v510_v29, %v512_v21  ;;  %v632_v33 = vmax.f32 %v630_v10, %v532_v30  ;;  %v636_v34 = vmax.f32 %v532_v30, %v534_v22 }
  0xf9   :  { %v579_v35 = vld [vmem:[#allocation2] ss:$2 sm:$0x1f]  ;;  %v589_v36 = vld [vmem:[#allocation2 + $0x1] ss:$2 sm:$0x1f] }
  0xfa   :  { %v598_v37 = vmax.f32 %v579_v35, %v589_v36  ;;  %v604_v38 = vld [vmem:[#allocation2 + $0x2] ss:$2 sm:$0x1f]  ;;  %557 = vst [vmem:[#allocation2 + $0x18] sm:$0xff] %v554_v31  ;;  %v791_v39 = vpop.f32.mrb[12].mxu0  ;;  %v815_v40 = vpop.f32.mrb[12].mxu1 }
  0xfb   :  { %627 = vst [vmem:[#allocation2] sm:$0xff] %v625_v3  ;;  %628 = vst [vmem:[#allocation2 + $0x8] sm:$0xff] %v626_v9  ;;  %v515_v41 = vmax.f32 %v791_v39, 0.0  ;;  %v537_v42 = vmax.f32 %v815_v40, 0.0  ;;  %v362_v43 = vpop.f32.mrb[13].mxu0  ;;  %v456_v44 = vpop.f32.mrb[13].mxu1 }
  0xfc   :  { %v613_v45 = vmax.f32 %v598_v37, %v604_v38  ;;  %v513_v46 = vmax.f32 %v362_v43, 0.0  ;;  %v535_v47 = vmax.f32 %v456_v44, 0.0  ;;  %v792_v48 = vpop.f32.mrb[14].mxu0  ;;  %v816_v49 = vpop.f32.mrb[14].mxu1 }
  0xfd   :  { %v516_v50 = vmax.f32 %v792_v48, 0.0  ;;  %v538_v51 = vmax.f32 %v816_v49, 0.0  ;;  %v365_v52 = vpop.f32.mrb[15].mxu0  ;;  %v459_v53 = vpop.f32.mrb[15].mxu1 }
  0xfe   :  { %618 = vst [vmem:[%s1012_s2] sm:$0x1f] %v613_v45  ;;  %v560_v54 = vmax.f32 %v558_v26, %v513_v46  ;;  %v565_v55 = vmax.f32 %v513_v46, %v515_v41  ;;  %v637_v56 = vmax.f32 %v635_v28, %v535_v47  ;;  %v641_v57 = vmax.f32 %v535_v47, %v537_v42 }
  0xff   :  { %v514_v58 = vmax.f32 %v365_v52, 0.0  ;;  %v536_v59 = vmax.f32 %v459_v53, 0.0 }
 0x100   :  { %563 = vst [vmem:[#allocation2 + $0x20] sm:$0xff] %v560_v54 }
 0x101   :  { %v581_v60 = vld [vmem:[#allocation2 + $0x10] ss:$2 sm:$0x1f]  ;;  %v591_v61 = vld [vmem:[#allocation2 + $0x11] ss:$2 sm:$0x1f]  ;;  %v561_v62 = vmax.f32 %v559_v32, %v514_v58  ;;  %v566_v63 = vmax.f32 %v514_v58, %v516_v50  ;;  %v638_v0 = vmax.f32 %v636_v34, %v536_v59  ;;  %v642_v1 = vmax.f32 %v536_v59, %v538_v51 }
 0x102   :  { %v653_v2 = vld [vmem:[#allocation2] ss:$2 sm:$0x1f]  ;;  %v658_v3 = vld [vmem:[#allocation2 + $0x1] ss:$2 sm:$0x1f]  ;;  %v599_v4 = vmax.f32 %v581_v60, %v591_v61 }
 0x103   :  { %v663_v5 = vmax.f32 %v653_v2, %v658_v3  ;;  %v606_v6 = vld [vmem:[#allocation2 + $0x12] ss:$2 sm:$0x1f]  ;;  %564 = vst [vmem:[#allocation2 + $0x28] sm:$0xff] %v561_v62  ;;  %v795_v9 = vpop.f32.mrb[16].mxu0  ;;  %v819_v10 = vpop.f32.mrb[16].mxu1 }
 0x104   :  { %v668_v7 = vld [vmem:[#allocation2 + $0x2] ss:$2 sm:$0x1f]  ;;  %v614_v8 = vmax.f32 %v599_v4, %v606_v6  ;;  %633 = vst [vmem:[#allocation2 + $0x10] sm:$0xff] %v631_v27  ;;  %634 = vst [vmem:[#allocation2 + $0x18] sm:$0xff] %v632_v33  ;;  %v519_v12 = vmax.f32 %v795_v9, 0.0 }
 0x105   :  { %v673_v11 = vmax.f32 %v663_v5, %v668_v7  ;;  %v541_v13 = vmax.f32 %v819_v10, 0.0  ;;  %v378_v14 = vpop.f32.mrb[17].mxu0  ;;  %v472_v15 = vpop.f32.mrb[17].mxu1 }
 0x106   :  { %619 = vst [vmem:[%s1012_s2 + $0x8] sm:$0x1f] %v614_v8  ;;  %v517_v16 = vmax.f32 %v378_v14, 0.0  ;;  %v539_v17 = vmax.f32 %v472_v15, 0.0  ;;  %v796_v18 = vpop.f32.mrb[18].mxu0  ;;  %v820_v19 = vpop.f32.mrb[18].mxu1 }
 0x107   :  { %739 = vst [vmem:[%s1012_s2 + $0x28] sm:$0x1f] %v673_v11  ;;  %v520_v20 = vmax.f32 %v796_v18, 0.0  ;;  %v542_v21 = vmax.f32 %v820_v19, 0.0  ;;  %v381_v22 = vpop.f32.mrb[19].mxu0  ;;  %v475_v23 = vpop.f32.mrb[19].mxu1 }
 0x108   :  { %v567_v24 = vmax.f32 %v565_v55, %v517_v16  ;;  %v572_v25 = vmax.f32 %v517_v16, %v519_v12  ;;  %v643_v26 = vmax.f32 %v641_v57, %v539_v17  ;;  %v647_v27 = vmax.f32 %v539_v17, %v541_v13 }
 0x109   :  { %v518_v28 = vmax.f32 %v381_v22, 0.0  ;;  %v540_v29 = vmax.f32 %v475_v23, 0.0  ;;  %v799_v30 = vpop.f32.mrb[20].mxu0  ;;  %v823_v31 = vpop.f32.mrb[20].mxu1 }
 0x10a   :  { %v583_v32 = vld [vmem:[#allocation2 + $0x20] ss:$2 sm:$0x1f]  ;;  %v593_v33 = vld [vmem:[#allocation2 + $0x21] ss:$2 sm:$0x1f] }
 0x10b   :  { %570 = vst [vmem:[#allocation2 + $0x30] sm:$0xff] %v567_v24  ;;  %v654_v34 = vld [vmem:[#allocation2 + $0x10] ss:$2 sm:$0x1f]  ;;  %v600_v36 = vmax.f32 %v583_v32, %v593_v33  ;;  %v568_v37 = vmax.f32 %v566_v63, %v518_v28  ;;  %v573_v38 = vmax.f32 %v518_v28, %v520_v20  ;;  %v644_v39 = vmax.f32 %v642_v1, %v540_v29  ;;  %v394_v45 = vpop.f32.mrb[21].mxu0  ;;  %v488_v46 = vpop.f32.mrb[21].mxu1 }
 0x10c   :  { %v659_v35 = vld [vmem:[#allocation2 + $0x11] ss:$2 sm:$0x1f]  ;;  %v608_v41 = vld [vmem:[#allocation2 + $0x22] ss:$2 sm:$0x1f]  ;;  %v648_v42 = vmax.f32 %v540_v29, %v542_v21 }
 0x10d   :  { %v664_v40 = vmax.f32 %v654_v34, %v659_v35  ;;  %v669_v43 = vld [vmem:[#allocation2 + $0x12] ss:$2 sm:$0x1f]  ;;  %v615_v44 = vmax.f32 %v600_v36, %v608_v41  ;;  %639 = vst [vmem:[#allocation2 + $0x20] sm:$0xff] %v637_v56  ;;  %640 = vst [vmem:[#allocation2 + $0x28] sm:$0xff] %v638_v0  ;;  %v521_v48 = vmax.f32 %v394_v45, 0.0 }
 0x10e   :  { %571 = vst [vmem:[#allocation2 + $0x38] sm:$0xff] %v568_v37  ;;  %v543_v49 = vmax.f32 %v488_v46, 0.0  ;;  %v800_v50 = vpop.f32.mrb[22].mxu0  ;;  %v824_v51 = vpop.f32.mrb[22].mxu1 }
 0x10f   :  { %v674_v47 = vmax.f32 %v664_v40, %v669_v43  ;;  %620 = vst [vmem:[%s1012_s2 + $0x10] sm:$0x1f] %v615_v44  ;;  %v397_v52 = vpop.f32.mrb[23].mxu0  ;;  %v491_v53 = vpop.f32.mrb[23].mxu1  ;;  %v574_v54 = vmax.f32 %v572_v25, %v521_v48 }
 0x110   :  { %v649_v55 = vmax.f32 %v647_v27, %v543_v49  ;;  %v522_v56 = vmax.f32 %v397_v52, 0.0  ;;  %v544_v57 = vmax.f32 %v491_v53, 0.0 }
 0x111   :  { %740 = vst [vmem:[%s1012_s2 + $0x30] sm:$0x1f] %v674_v47  ;;  %577 = vst [vmem:[#allocation2 + $0x40] sm:$0xff] %v574_v54 }
 0x112   :  { %v575_v58 = vmax.f32 %v573_v38, %v522_v56  ;;  %v650_v59 = vmax.f32 %v648_v42, %v544_v57 }
 0x114   :  { %v655_v60 = vld [vmem:[#allocation2 + $0x20] ss:$2 sm:$0x1f]  ;;  %v660_v61 = vld [vmem:[#allocation2 + $0x21] ss:$2 sm:$0x1f] }
 0x115   :  { %578 = vst [vmem:[#allocation2 + $0x48] sm:$0xff] %v575_v58  ;;  %v665_v62 = vmax.f32 %v655_v60, %v660_v61  ;;  %v670_v63 = vld [vmem:[#allocation2 + $0x22] ss:$2 sm:$0x1f] }
 0x116   :  { %v585_v0 = vld [vmem:[#allocation2 + $0x30] ss:$2 sm:$0x1f]  ;;  %v595_v1 = vld [vmem:[#allocation2 + $0x31] ss:$2 sm:$0x1f] }
 0x117   :  { %v610_v2 = vld [vmem:[#allocation2 + $0x32] ss:$2 sm:$0x1f]  ;;  %v675_v3 = vmax.f32 %v665_v62, %v670_v63  ;;  %v601_v4 = vmax.f32 %v585_v0, %v595_v1 }
 0x118   :  { %645 = vst [vmem:[#allocation2 + $0x30] sm:$0xff] %v643_v26  ;;  %646 = vst [vmem:[#allocation2 + $0x38] sm:$0xff] %v644_v39 }
 0x119   :  { %741 = vst [vmem:[%s1012_s2 + $0x38] sm:$0x1f] %v675_v3  ;;  %v616_v5 = vmax.f32 %v601_v4, %v610_v2 }
 0x11b   :  { %621 = vst [vmem:[%s1012_s2 + $0x18] sm:$0x1f] %v616_v5 }
 0x11c   :  { %v587_v6 = vld [vmem:[#allocation2 + $0x40] ss:$2 sm:$0x1f]  ;;  %v597_v7 = vld [vmem:[#allocation2 + $0x41] ss:$2 sm:$0x1f] }
 0x11d   :  { %v602_v8 = vmax.f32 %v587_v6, %v597_v7  ;;  %v612_v9 = vld [vmem:[#allocation2 + $0x42] ss:$2 sm:$0x1f] }
 0x11e   :  { %651 = vst [vmem:[#allocation2 + $0x40] sm:$0xff] %v649_v55  ;;  %652 = vst [vmem:[#allocation2 + $0x48] sm:$0xff] %v650_v59 }
 0x11f   :  { %v656_v10 = vld [vmem:[#allocation2 + $0x30] ss:$2 sm:$0x1f]  ;;  %v661_v11 = vld [vmem:[#allocation2 + $0x31] ss:$2 sm:$0x1f]  ;;  %v617_v12 = vmax.f32 %v602_v8, %v612_v9 }
 0x120   :  { %v666_v13 = vmax.f32 %v656_v10, %v661_v11  ;;  %v671_v14 = vld [vmem:[#allocation2 + $0x32] ss:$2 sm:$0x1f] }
 0x121   :  { %622 = vst [vmem:[%s1012_s2 + $0x20] sm:$0x1f] %v617_v12 }
 0x122   :  { %v676_v15 = vmax.f32 %v666_v13, %v671_v14 }
 0x124   :  { %742 = vst [vmem:[%s1012_s2 + $0x40] sm:$0x1f] %v676_v15 }
 0x125   :  { %v657_v16 = vld [vmem:[#allocation2 + $0x40] ss:$2 sm:$0x1f]  ;;  %v662_v17 = vld [vmem:[#allocation2 + $0x41] ss:$2 sm:$0x1f] }
 0x126   :  { %v667_v18 = vmax.f32 %v657_v16, %v662_v17  ;;  %v672_v19 = vld [vmem:[#allocation2 + $0x42] ss:$2 sm:$0x1f] }
 0x128   :  { %v677_v20 = vmax.f32 %v667_v18, %v672_v19 }
 0x12a   :  { %743 = vst [vmem:[%s1012_s2 + $0x48] sm:$0x1f] %v677_v20 }

</bundles_post_ra>
